<compile_context>
chip_gen: v5e
topology: v5e:2x2
jax: 0.10.0
libtpu: 0.0.40
codegen_flags: <defaults>
</compile_context>

<pallas_src>
import functools

import jax
import jax.numpy as jnp
import numpy as np
from jax import lax
from jax.experimental import pallas as pl
from jax.experimental.pallas import tpu as pltpu


_VMEM_BUDGET_BYTES = 32 * 1024 * 1024    # conservative per-core budget (v5e/v6e/v7x safe)
_VMEM_MARGIN_BYTES = 2 * 1024 * 1024     # headroom for compiler-internal scratch / padding
_TARGET_STEP_BYTES = 2 * 1024 * 1024     # aim to move ~1-2 MiB of input per grid step


# ----------------------------------------------------------------------------
# Kernels
# ----------------------------------------------------------------------------

def _se_fused_kernel(x_ref, w1t_ref, w2t_ref, o_ref):
    """Single-pass SE for Bt batch elements.

    x_ref / o_ref : (Bt, C, HW)  NCHW-native slab(s)
    w1t_ref       : (C, Cr)      first Linear weight, transposed  (y @ W1^T)
    w2t_ref       : (Cr, C)      second Linear weight, transposed (h @ W2^T)
    """
    hw = x_ref.shape[-1]
    # Global average pool over H*W (lane reduce), accumulated in f32 so bf16
    # inputs don't drift.
    y = jnp.sum(x_ref[...].astype(jnp.float32), axis=-1) * (1.0 / hw)   # (Bt, C)
    # Squeeze/excite MLP batched over the Bt elements of this step (M = Bt on
    # the MXU), f32 accumulation, default precision.
    h = jnp.dot(y, w1t_ref[...].astype(jnp.float32),
                preferred_element_type=jnp.float32)                     # (Bt, Cr)
    h = jnp.maximum(h, 0.0)
    z = jnp.dot(h, w2t_ref[...].astype(jnp.float32),
                preferred_element_type=jnp.float32)                     # (Bt, C)
    # sigmoid = exp (EUP) + approximate reciprocal (EUP); keeps the VALU clear.
    s = pl.reciprocal(1.0 + jnp.exp(-z), approx=True)                   # (Bt, C)
    gate = jnp.expand_dims(s, -1).astype(x_ref.dtype)                   # (Bt, C, 1)
    # Re-read x at the multiply site (don't keep the slab live across the MLP).
    o_ref[...] = (x_ref[...] * gate).astype(o_ref.dtype)


def _se_gate_kernel(x_ref, w1t_ref, w2t_ref, s_ref, acc_ref, *, total_hw):
    """Tiled path, pass A: streaming global-average-pool + SE MLP.

    x_ref  : (1, C, HWt) spatial tile of one batch element
    w1t_ref: (C, Cr), w2t_ref: (Cr, C)   (VMEM-resident across the grid)
    s_ref  : (1, C) f32 gate output (resident across the HW grid axis)
    acc_ref: (1, C) f32 running pool sum
    """
    j = pl.program_id(1)
    hwt = x_ref.shape[-1]

    @pl.when(j == 0)
    def _init():
        acc_ref[...] = jnp.zeros_like(acc_ref)

    # Mask lanes past the true H*W extent (the last tile may be ragged).
    lane = lax.broadcasted_iota(jnp.int32, x_ref.shape, 2) + j * hwt
    x = x_ref[...].astype(jnp.float32)
    xm = jnp.where(lane < total_hw, x, 0.0)
    acc_ref[...] += jnp.sum(xm, axis=-1)                                # (1, C)

    @pl.when(j == pl.num_programs(1) - 1)
    def _finalize():
        y = acc_ref[...] * (1.0 / total_hw)                             # (1, C)
        h = jnp.dot(y, w1t_ref[...].astype(jnp.float32),
                    preferred_element_type=jnp.float32)                 # (1, Cr)
        h = jnp.maximum(h, 0.0)
        z = jnp.dot(h, w2t_ref[...].astype(jnp.float32),
                    preferred_element_type=jnp.float32)                 # (1, C)
        s_ref[...] = pl.reciprocal(1.0 + jnp.exp(-z), approx=True)


def _se_scale_kernel(x_ref, s_ref, o_ref):
    """Tiled path, pass B: apply the (1, C) gate to one (1, C, HWt) tile."""
    gate = jnp.expand_dims(s_ref[...], -1).astype(x_ref.dtype)          # (1, C, 1)
    o_ref[...] = (x_ref[...] * gate).astype(o_ref.dtype)


# ----------------------------------------------------------------------------
# Wrappers
# ----------------------------------------------------------------------------

def _largest_divisor_leq(n, cap):
    cap = max(1, min(n, int(cap)))
    for d in range(cap, 0, -1):
        if n % d == 0:
            return d
    return 1


def _se_forward_fused(x3, w1, w2, budget):
    """Fused single-pass path: per-step slab(s) fully resident in VMEM."""
    b, c, hw = x3.shape
    cr = w1.shape[0]
    itemsize = jnp.dtype(x3.dtype).itemsize
    slab = c * hw * itemsize
    wbytes = 2 * (w1.size + w2.size) * jnp.dtype(w1.dtype).itemsize

    # Pick how many batch elements to pack into one grid step:
    #   - 4x slab (double-buffered in + out) must fit the VMEM budget,
    #   - move >= ~1-2 MiB per step (amortize per-step overhead),
    #   - keep >= 2 grid steps when B >= 2 so both v7x TensorCores get work.
    #     (For B == 1 the single-step grid uses one TC; the tiled path's
    #     2-D grid covers the large-map case.)
    max_bt_fit = max(1, (budget - wbytes - _VMEM_MARGIN_BYTES) // (4 * slab))
    target_bt = max(1, -(-_TARGET_STEP_BYTES // slab))
    bt_cap = min(b, max_bt_fit, target_bt)
    if b >= 2:
        bt_cap = min(bt_cap, max(1, b // 2))
    bt = _largest_divisor_leq(b, bt_cap)

    w1t = jnp.transpose(w1)          # (C, Cr)  -- tiny
    w2t = jnp.transpose(w2)          # (Cr, C)  -- tiny

    vmem_limit = int(4 * bt * slab + wbytes + _VMEM_MARGIN_BYTES)

    return pl.pallas_call(
        _se_fused_kernel,
        out_shape=jax.ShapeDtypeStruct((b, c, hw), x3.dtype),
        grid_spec=pltpu.PrefetchScalarGridSpec(
            num_scalar_prefetch=0,
            grid=(b // bt,),
            in_specs=[
                pl.BlockSpec((bt, c, hw), lambda i: (i, 0, 0)),   # x slab(s)
                pl.BlockSpec((c, cr), lambda i: (0, 0)),          # W1^T (resident)
                pl.BlockSpec((cr, c), lambda i: (0, 0)),          # W2^T (resident)
            ],
            out_specs=pl.BlockSpec((bt, c, hw), lambda i: (i, 0, 0)),
        ),
        compiler_params=pltpu.CompilerParams(
            dimension_semantics=("parallel",),
            vmem_limit_bytes=vmem_limit),
    )(x3, w1t, w2t)


def _se_forward_tiled(x3, w1, w2, budget):
    """Spatially-tiled two-pass fallback for large H*W feature maps."""
    b, c, hw = x3.shape
    cr = w1.shape[0]
    itemsize = jnp.dtype(x3.dtype).itemsize
    wbytes = 2 * (w1.size + w2.size) * jnp.dtype(w1.dtype).itemsize

    # Pass B is the binding VMEM user: in + out tiles, double-buffered.
    per_lane = 4 * c * itemsize
    hwt = max(128, ((budget - _VMEM_MARGIN_BYTES) // per_lane) // 128 * 128)
    hwt = int(min(hwt, (hw // 128) * 128))
    nt = pl.cdiv(hw, hwt)

    w1t = jnp.transpose(w1)          # (C, Cr)
    w2t = jnp.transpose(w2)          # (Cr, C)

    tile_bytes = c * hwt * itemsize
    gate_bytes = 64 * 1024           # small padded (1, C) buffers
    vmem_a = int(2 * tile_bytes + wbytes + gate_bytes + _VMEM_MARGIN_BYTES)
    vmem_b = int(4 * tile_bytes + gate_bytes + _VMEM_MARGIN_BYTES)

    # Pass A: streaming pool (accumulated in VMEM scratch) + MLP -> gate (B, 1, C).
    gate = pl.pallas_call(
        functools.partial(_se_gate_kernel, total_hw=hw),
        out_shape=jax.ShapeDtypeStruct((b, 1, c), jnp.float32),
        grid_spec=pltpu.PrefetchScalarGridSpec(
            num_scalar_prefetch=0,
            grid=(b, nt),
            in_specs=[
                pl.BlockSpec((1, c, hwt), lambda i, j: (i, 0, j)),
                pl.BlockSpec((c, cr), lambda i, j: (0, 0)),
                pl.BlockSpec((cr, c), lambda i, j: (0, 0)),
            ],
            out_specs=pl.BlockSpec((None, 1, c), lambda i, j: (i, 0, 0)),
            scratch_shapes=[pltpu.VMEM((1, c), jnp.float32)],
        ),
        compiler_params=pltpu.CompilerParams(
            dimension_semantics=("parallel", "arbitrary"),
            vmem_limit_bytes=vmem_a),
    )(x3, w1t, w2t)

    # Pass B: stream the tiles again and apply the gate.
    return pl.pallas_call(
        _se_scale_kernel,
        out_shape=jax.ShapeDtypeStruct((b, c, hw), x3.dtype),
        grid_spec=pltpu.PrefetchScalarGridSpec(
            num_scalar_prefetch=0,
            grid=(b, nt),
            in_specs=[
                pl.BlockSpec((1, c, hwt), lambda i, j: (i, 0, j)),
                pl.BlockSpec((None, 1, c), lambda i, j: (i, 0, 0)),
            ],
            out_specs=pl.BlockSpec((1, c, hwt), lambda i, j: (i, 0, j)),
        ),
        compiler_params=pltpu.CompilerParams(
            dimension_semantics=("parallel", "parallel"),
            vmem_limit_bytes=vmem_b),
    )(x3, gate)


def se_layer_forward(x, w1, w2, *, max_vmem_bytes=None):
    """SELayer forward (PyTorch semantics).

    x : (B, C, H, W)
    w1: (C//r, C)   -- nn.Linear(C, C//r, bias=False).weight
    w2: (C, C//r)   -- nn.Linear(C//r, C, bias=False).weight
    returns (B, C, H, W), same dtype as x.
    """
    b, c, h, w = x.shape
    cr, c_in = w1.shape
    assert c_in == c and w2.shape == (c, cr), "weight shapes must match SELayer"
    hw = h * w
    budget = _VMEM_BUDGET_BYTES if max_vmem_bytes is None else int(max_vmem_bytes)
    itemsize = jnp.dtype(x.dtype).itemsize
    slab = c * hw * itemsize
    wbytes = 2 * (w1.size + w2.size) * jnp.dtype(w1.dtype).itemsize

    x3 = x.reshape(b, c, hw)          # free reshape: NO NCHW<->NHWC transpose

    fused_fits = 4 * slab + wbytes + _VMEM_MARGIN_BYTES <= budget
    # Tiny spatial maps always take the fused path (tiling needs H*W >= 256).
    # TODO(synk): channel-tiled fallback for C so large that even a (C, 128)
    # tile overflows VMEM (not a realistic SE configuration).
    if fused_fits or hw < 256:
        out3 = _se_forward_fused(x3, w1, w2, budget)
    else:
        out3 = _se_forward_tiled(x3, w1, w2, budget)
    return out3.reshape(b, c, h, w)


# ----------------------------------------------------------------------------
# Pure-JAX reference (correctness check only)
# ----------------------------------------------------------------------------

def reference_forward(x, w1, w2):
    xf = x.astype(jnp.float32)
    y = jnp.mean(xf, axis=(2, 3))                                   # (B, C)
    hmid = jnp.maximum(y @ w1.astype(jnp.float32).T, 0.0)           # (B, C//r)
    s = jax.nn.sigmoid(hmid @ w2.astype(jnp.float32).T)             # (B, C)
    return xf * s[:, :, None, None]


# ----------------------------------------------------------------------------

if __name__ == "__main__":
    key = jax.random.PRNGKey(0)
    kx, k1, k2, kx2 = jax.random.split(key, 4)

    # SELayer(channel=128, reduction=16) -> hidden width 8.
    B, C, H, W = 2, 128, 16, 16
    REDUCTION = 16
    CR = C // REDUCTION

    def uinit(k, shape, fan_in):
        bound = 1.0 / np.sqrt(fan_in)
        return jax.random.uniform(k, shape, jnp.float32, -bound, bound)

    x = jax.random.normal(kx, (B, C, H, W), jnp.float32)
    w1 = uinit(k1, (CR, C), C)       # nn.Linear(C, C//r, bias=False).weight
    w2 = uinit(k2, (C, CR), CR)      # nn.Linear(C//r, C, bias=False).weight

    fwd = jax.jit(se_layer_forward, static_argnames=("max_vmem_bytes",))

    # 1) f32, fused single-pass path.
    out = jax.block_until_ready(fwd(x, w1, w2))
    np.testing.assert_allclose(np.asarray(out),
                               np.asarray(reference_forward(x, w1, w2)),
                               rtol=5e-3, atol=5e-3)

    # 2) bf16 activations/weights (pool + MLP still accumulate in f32).
    xb, w1b, w2b = (a.astype(jnp.bfloat16) for a in (x, w1, w2))
    out_b = jax.block_until_ready(fwd(xb, w1b, w2b))
    np.testing.assert_allclose(np.asarray(out_b.astype(jnp.float32)),
                               np.asarray(reference_forward(xb, w1b, w2b)),
                               rtol=2e-2, atol=1e-2)

    # 3) Spatially-tiled two-pass fallback, forced via a tiny VMEM budget.
    #    H*W = 320 = 2*128 + 64 also exercises the ragged last tile.
    x2 = jax.random.normal(kx2, (B, C, 20, 16), jnp.float32)
    out_t = jax.block_until_ready(fwd(x2, w1, w2, max_vmem_bytes=300 * 1024))
    np.testing.assert_allclose(np.asarray(out_t),
                               np.asarray(reference_forward(x2, w1, w2)),
                               rtol=5e-3, atol=5e-3)

    print("KERNEL_OK")
</pallas_src>

<mosaic_0001>
module attributes {stable_mosaic.version = 11 : i64} {
  func.func @_se_fused_kernel(%arg0: i32, %arg1: memref<1x128x256xf32, #tpu.memory_space<vmem>>, %arg2: memref<128x8xf32, #tpu.memory_space<vmem>>, %arg3: memref<8x128xf32, #tpu.memory_space<vmem>>, %arg4: memref<1x128x256xf32, #tpu.memory_space<vmem>>) attributes {dimension_semantics = [#tpu.dimension_semantics<parallel>], iteration_bounds = array<i64: 2>, scalar_prefetch = 0 : i64, scratch_operands = 0 : i64, tpu.core_type = #tpu.core_type<tc>, window_params = [{transform_indices = @transform_0, window_bounds = array<i64: 1, 128, 256>}, {pipeline_mode = #tpu.pipeline_mode<synchronous>, transform_indices = @transform_1, window_bounds = array<i64: 128, 8>}, {pipeline_mode = #tpu.pipeline_mode<synchronous>, transform_indices = @transform_2, window_bounds = array<i64: 8, 128>}, {transform_indices = @transform_3, window_bounds = array<i64: 1, 128, 256>}]} {
    %c0 = arith.constant 0 : index
    %c0_0 = arith.constant 0 : index
    %c0_1 = arith.constant 0 : index
    %0 = vector.load %arg1[%c0, %c0_0, %c0_1] : memref<1x128x256xf32, #tpu.memory_space<vmem>>, vector<1x128x256xf32>
    %cst = arith.constant dense<0.000000e+00> : vector<1x128xf32>
    %1 = vector.multi_reduction <add>, %0, %cst [2] : vector<1x128x256xf32> to vector<1x128xf32>
    %cst_2 = arith.constant 3.906250e-03 : f32
    %2 = vector.broadcast %cst_2 : f32 to vector<1x128xf32>
    %3 = arith.mulf %1, %2 : vector<1x128xf32>
    %c0_3 = arith.constant 0 : index
    %c0_4 = arith.constant 0 : index
    %4 = vector.load %arg2[%c0_3, %c0_4] : memref<128x8xf32, #tpu.memory_space<vmem>>, vector<128x8xf32>
    %cst_5 = arith.constant dense<0.000000e+00> : vector<1x8xf32>
    %5 = tpu.matmul %3, %4, %cst_5 {dimension_numbers = #tpu.dot_dimension_numbers<[1], [0], [0], [1], [0, 0, 1, 1], [], []>} : vector<1x128xf32>, vector<128x8xf32>, vector<1x8xf32> -> vector<1x8xf32>
    %cst_6 = arith.constant 0.000000e+00 : f32
    %6 = vector.broadcast %cst_6 : f32 to vector<1x8xf32>
    %7 = arith.maximumf %5, %6 : vector<1x8xf32>
    %c0_7 = arith.constant 0 : index
    %c0_8 = arith.constant 0 : index
    %8 = vector.load %arg3[%c0_7, %c0_8] : memref<8x128xf32, #tpu.memory_space<vmem>>, vector<8x128xf32>
    %cst_9 = arith.constant dense<0.000000e+00> : vector<1x128xf32>
    %9 = tpu.matmul %7, %8, %cst_9 {dimension_numbers = #tpu.dot_dimension_numbers<[1], [0], [0], [1], [0, 0, 1, 1], [], []>} : vector<1x8xf32>, vector<8x128xf32>, vector<1x128xf32> -> vector<1x128xf32>
    %cst_10 = arith.constant 0.000000e+00 : f32
    %10 = vector.broadcast %cst_10 : f32 to vector<1x128xf32>
    %11 = arith.subf %10, %9 : vector<1x128xf32>
    %12 = math.exp %11 : vector<1x128xf32>
    %cst_11 = arith.constant 1.000000e+00 : f32
    %13 = vector.broadcast %cst_11 : f32 to vector<1x128xf32>
    %14 = arith.addf %13, %12 : vector<1x128xf32>
    %15 = tpu.reciprocal %14 {approx = true} : vector<1x128xf32> -> vector<1x128xf32>
    %16 = vector.shape_cast %15 : vector<1x128xf32> to vector<1x128x1xf32>
    %c0_12 = arith.constant 0 : index
    %c0_13 = arith.constant 0 : index
    %c0_14 = arith.constant 0 : index
    %17 = vector.load %arg1[%c0_12, %c0_13, %c0_14] : memref<1x128x256xf32, #tpu.memory_space<vmem>>, vector<1x128x256xf32>
    %18 = vector.broadcast %16 : vector<1x128x1xf32> to vector<1x128x256xf32>
    %19 = arith.mulf %17, %18 : vector<1x128x256xf32>
    %c0_15 = arith.constant 0 : index
    %c0_16 = arith.constant 0 : index
    %c0_17 = arith.constant 0 : index
    %20 = vector.load %arg4[%c0_15, %c0_16, %c0_17] : memref<1x128x256xf32, #tpu.memory_space<vmem>>, vector<1x128x256xf32>
    tpu.vector_store %arg4[%c0_15, %c0_16, %c0_17], %19 {strides = array<i32>} : memref<1x128x256xf32, #tpu.memory_space<vmem>>, vector<1x128x256xf32>,
    return
  }
  func.func @transform_0(%arg0: i32) -> (i32, i32, i32) {
    %c0_i32 = arith.constant 0 : i32
    %c0_i32_0 = arith.constant 0 : i32
    %c0_i32_1 = arith.constant 0 : i32
    return %arg0, %c0_i32, %c0_i32_0 : i32, i32, i32
  }
  func.func @transform_1(%arg0: i32) -> (i32, i32) {
    %c0_i32 = arith.constant 0 : i32
    %c0_i32_0 = arith.constant 0 : i32
    %c0_i32_1 = arith.constant 0 : i32
    return %c0_i32, %c0_i32_0 : i32, i32
  }
  func.func @transform_2(%arg0: i32) -> (i32, i32) {
    %c0_i32 = arith.constant 0 : i32
    %c0_i32_0 = arith.constant 0 : i32
    %c0_i32_1 = arith.constant 0 : i32
    return %c0_i32, %c0_i32_0 : i32, i32
  }
  func.func @transform_3(%arg0: i32) -> (i32, i32, i32) {
    %c0_i32 = arith.constant 0 : i32
    %c0_i32_0 = arith.constant 0 : i32
    %c0_i32_1 = arith.constant 0 : i32
    return %arg0, %c0_i32, %c0_i32_0 : i32, i32, i32
  }
}

</mosaic_0001>

<bundles_post_ra>
// kernel: se_layer_forward.1
= control target key start
LH: loop header
LB: loop body
LE: loop exit
PB: predicated region body
PF: predicated region fallthrough
CT: control target
= control target key end

     0   :  { %s701_s12 = smov 0   ;;  %s992_s0 = inlined_call_operand.vmem [shape: f32[2,128,256], index: 0, kind: input, shape index: {}]   ;;  %s993_s1 = inlined_call_operand.vmem [shape: f32[128,8], index: 1, kind: input, shape index: {}]   ;;  %s994_s2 = inlined_call_operand.vmem [shape: f32[8,128], index: 2, kind: input, shape index: {}]   ;;  %s995_s3 = inlined_call_operand.vmem [shape: f32[2,128,256], index: 3, kind: output, shape index: {}]  }
   0x1 LB: > { %s630_s13 = sadd.s32 4294967295, %s679_s12   ;;  %p634_p0 = scmp.ge.s32.totalorder %s679_s12, 1  ;;  %s679_s12 = sphi %s701_s12, %s13_s12  }
   0x2   : > { %p137_p1 = scmp.lt.s32.totalorder %s679_s12, 3 }
   0x4   : > { %p138_p2 = pnand %p634_p0, %p137_p1 }
   0x5   : > { %p161_p3 = scmp.lt.s32.totalorder (!%p138_p2), %s630_s13, 1 }
   0x6   : > { %141 = sbr.rel (%p138_p2) target bundleno = 654 (0x28e), region = 32 }
   0xb   : > { %s997_s13 = smov (!%p161_p3, %s630_s13), 1  ;;  %v282_v48 = vld [vmem:[%s993_s1 + $0x78] sm:$0xff]  ;;  %v281_v49 = vld [vmem:[%s993_s1 + $0x70] sm:$0xff]  ;;  %v280_v50 = vld [vmem:[%s993_s1 + $0x68] sm:$0xff]  ;;  %v299_v59 = vlaneseq  ;;  %vm304_vm0 = vcmask 130112   ;;  %vm308_vm1 = vcmask 195712  }
   0xc   : > { %s642_s14 = sshll.u32 %s997_s13, 8  ;;  %363 = vmatpush.msra.mxu0 %v282_v48  ;;  %v279_v51 = vld [vmem:[%s993_s1 + $0x60] sm:$0xff]  ;;  %v278_v52 = vld [vmem:[%s993_s1 + $0x58] sm:$0xff]  ;;  %v277_v53 = vld [vmem:[%s993_s1 + $0x50] sm:$0xff]  ;;  %vm312_vm2 = vcmask 261312   ;;  %vm316_vm3 = vcmask 326912  }
   0xd   : > { %s717_s17 = scalar_lea.vmem %s992_s0, %s642_s14  ;;  %v276_v54 = vld [vmem:[%s993_s1 + $0x48] sm:$0xff]  ;;  %v275_v55 = vld [vmem:[%s993_s1 + $0x40] sm:$0xff]  ;;  %v274_v56 = vld [vmem:[%s993_s1 + $0x38] sm:$0xff]  ;;  %vm320_vm4 = vcmask 392512   ;;  %vm324_vm5 = vcmask 458112   ;;  %vm328_vm6 = vcmask 523712   ;;  %s923_s30 = scalar_lea.vmem %s995_s3, %s642_s14 }
   0xe   : > { %v720_v0 = vld [vmem:[%s717_s17] sm:$0xff]  ;;  %v723_v1 = vld [vmem:[%s717_s17 + $0x8] sm:$0xff]  ;;  %v744_v9 = vld [vmem:[%s717_s17 + $0x10] sm:$0xff]  ;;  %364 = vmatpush.msra.mxu0 %v281_v49  ;;  %vm332_vm7 = vcmask 589312   ;;  %vm336_vm8 = vcmask 654912   ;;  %vm340_vm9 = vcmask 720512  }
   0xf   : > { %v726_v2 = vld [vmem:[%s717_s17 + $0x20] sm:$0xff]  ;;  %v203_v3 = vadd.f32 %v723_v1, %v720_v0  ;;  %v731_v4 = vld [vmem:[%s717_s17 + $0x28] sm:$0xff]  ;;  %v747_v10 = vld [vmem:[%s717_s17 + $0x18] sm:$0xff]  ;;  %vm344_vm10 = vcmask 786112   ;;  %vm348_vm11 = vcmask 851712   ;;  %vm352_vm12 = vcmask 917312  }
  0x10   : > { %v734_v5 = vld [vmem:[%s717_s17 + $0x40] sm:$0xff]  ;;  %v737_v6 = vld [vmem:[%s717_s17 + $0x48] sm:$0xff]  ;;  %v209_v7 = vadd.f32 %v731_v4, %v726_v2  ;;  %v750_v11 = vld [vmem:[%s717_s17 + $0x30] sm:$0xff]  ;;  %v206_v15 = vadd.f32 %v747_v10, %v744_v9  ;;  %365 = vmatpush.msra.mxu0 %v280_v50  ;;  %vm356_vm13 = vcmask 982912   ;;  %vm360_vm14 = vcmask 1048512  }
  0x11   : > { %v215_v8 = vadd.f32 %v737_v6, %v734_v5  ;;  %204 = vadd.xlane.f32.xlu0 %v203_v3  ;;  %v753_v12 = vld [vmem:[%s717_s17 + $0x38] sm:$0xff]  ;;  %v756_v13 = vld [vmem:[%s717_s17 + $0x50] sm:$0xff]  ;;  %v768_v18 = vld [vmem:[%s717_s17 + $0x60] sm:$0xff]  ;;  %v884_v3 = vand.u32 127, %v299_v59  ;;  %vm385_vm15 = vcmask 64512  }
  0x12   : > { %210 = vadd.xlane.f32.xlu1 %v209_v7  ;;  %v759_v14 = vld [vmem:[%s717_s17 + $0x58] sm:$0xff]  ;;  %v212_v16 = vadd.f32 %v753_v12, %v750_v11  ;;  %v771_v19 = vld [vmem:[%s717_s17 + $0x68] sm:$0xff]  ;;  %v774_v20 = vld [vmem:[%s717_s17 + $0x70] sm:$0xff]  ;;  %366 = vmatpush.msra.mxu0 %v279_v51 }
  0x13   : > { %216 = vadd.xlane.f32.xlu2 %v215_v8  ;;  %v218_v17 = vadd.f32 %v759_v14, %v756_v13  ;;  %v777_v21 = vld [vmem:[%s717_s17 + $0x78] sm:$0xff]  ;;  %v780_v22 = vld [vmem:[%s717_s17 + $0x80] sm:$0xff]  ;;  %v783_v23 = vld [vmem:[%s717_s17 + $0x88] sm:$0xff]  ;;  %v221_v24 = vadd.f32 %v771_v19, %v768_v18 }
  0x14   : > { %v224_v25 = vadd.f32 %v777_v21, %v774_v20  ;;  %v227_v26 = vadd.f32 %v783_v23, %v780_v22  ;;  %v792_v27 = vld [vmem:[%s717_s17 + $0x90] sm:$0xff]  ;;  %v795_v28 = vld [vmem:[%s717_s17 + $0x98] sm:$0xff]  ;;  %v798_v29 = vld [vmem:[%s717_s17 + $0xa0] sm:$0xff]  ;;  %367 = vmatpush.msra.mxu0 %v278_v52  ;;  %v314_v52 = vadd.s32 4294967264, %v884_v3 }
  0x15   : > { %v801_v30 = vld [vmem:[%s717_s17 + $0xa8] sm:$0xff]  ;;  %v804_v31 = vld [vmem:[%s717_s17 + $0xb0] sm:$0xff]  ;;  %v807_v32 = vld [vmem:[%s717_s17 + $0xb8] sm:$0xff]  ;;  %v230_v33 = vadd.f32 %v795_v28, %v792_v27 }
  0x16   : > { %v233_v34 = vadd.f32 %v801_v30, %v798_v29  ;;  %v236_v35 = vadd.f32 %v807_v32, %v804_v31  ;;  %v816_v36 = vld [vmem:[%s717_s17 + $0xc0] sm:$0xff]  ;;  %v819_v37 = vld [vmem:[%s717_s17 + $0xc8] sm:$0xff]  ;;  %v822_v38 = vld [vmem:[%s717_s17 + $0xd0] sm:$0xff]  ;;  %368 = vmatpush.msra.mxu0 %v277_v53 }
  0x17   : > { %v825_v39 = vld [vmem:[%s717_s17 + $0xd8] sm:$0xff]  ;;  %v828_v40 = vld [vmem:[%s717_s17 + $0xe0] sm:$0xff]  ;;  %v831_v41 = vld [vmem:[%s717_s17 + $0xe8] sm:$0xff]  ;;  %v239_v42 = vadd.f32 %v819_v37, %v816_v36 }
  0x18   : > { %v242_v43 = vadd.f32 %v825_v39, %v822_v38  ;;  %v245_v44 = vadd.f32 %v831_v41, %v828_v40  ;;  %v840_v45 = vld [vmem:[%s717_s17 + $0xf0] sm:$0xff]  ;;  %v843_v46 = vld [vmem:[%s717_s17 + $0xf8] sm:$0xff]  ;;  %369 = vmatpush.msra.mxu0 %v276_v54  ;;  %v272_v62 = vld [vmem:[%s993_s1 + $0x28] sm:$0xff] }
  0x19   : > { %207 = vadd.xlane.f32.xlu0 %v206_v15  ;;  %v248_v47 = vadd.f32 %v843_v46, %v840_v45  ;;  %v273_v58 = vld [vmem:[%s993_s1 + $0x30] sm:$0xff]  ;;  %v271_v63 = vld [vmem:[%s993_s1 + $0x20] sm:$0xff]  ;;  %v270_v7 = vld [vmem:[%s993_s1 + $0x18] sm:$0xff]  ;;  %v302_v15 = vadd.s32 4294967288, %v884_v3 }
  0x1a   : > { %213 = vadd.xlane.f32.xlu1 %v212_v16  ;;  %370 = vmatpush.msra.mxu0 %v275_v55  ;;  %v306_v16 = vadd.s32 4294967280, %v884_v3  ;;  %v267_v48 = vld [vmem:[%s993_s1] sm:$0xff]  ;;  %v318_v55 = vadd.s32 4294967256, %v884_v3 }
  0x1b   : > { %219 = vadd.xlane.f32.xlu2 %v218_v17 }
  0x1c   : > { %371 = vmatpush.msra.mxu0 %v274_v56 }
  0x1e   : > { %372 = vmatpush.msra.mxu0 %v273_v58 }
  0x20   : > { %373 = vmatpush.msra.mxu0 %v272_v62 }
  0x21   : > { %222 = vadd.xlane.f32.xlu0 %v221_v24 }
  0x22   : > { %225 = vadd.xlane.f32.xlu1 %v224_v25  ;;  %374 = vmatpush.msra.mxu0 %v271_v63  ;;  %v269_v25 = vld [vmem:[%s993_s1 + $0x10] sm:$0xff] }
  0x23   : > { %228 = vadd.xlane.f32.xlu2 %v227_v26 }
  0x24   : > { %375 = vmatpush.msra.mxu0 %v270_v7 }
  0x26   : > { %376 = vmatpush.msra.mxu0 %v269_v25  ;;  %v330_v25 = vadd.s32 4294967232, %v884_v3 }
  0x29   : > { %231 = vadd.xlane.f32.xlu0 %v230_v33  ;;  %v310_v33 = vadd.s32 4294967272, %v884_v3 }
  0x2a   : > { %234 = vadd.xlane.f32.xlu1 %v233_v34 }
  0x2b   : > { %237 = vadd.xlane.f32.xlu2 %v236_v35 }
  0x31   : > { %240 = vadd.xlane.f32.xlu0 %v239_v42 }
  0x32   : > { %243 = vadd.xlane.f32.xlu1 %v242_v43  ;;  %v268_v43 = vld [vmem:[%s993_s1 + $0x8] sm:$0xff] }
  0x33   : > { %246 = vadd.xlane.f32.xlu2 %v245_v44  ;;  %377 = vmatpush.msra.mxu0 %v268_v43 }
  0x35   : > { %378 = vmatpush.msra.mxu0 %v267_v48 }
  0x39   : > { %249 = vadd.xlane.f32.xlu0 %v248_v47 }
  0x84   : > { %v205_v57 = vpop.xlane.xlu0 %204 }
  0x85   : > { %v211_v60 = vpop.xlane.xlu1 %210  ;;  %v251_v8 = vmul.f32 0.00390625, %v205_v57  ;;  %v322_v57 = vadd.s32 4294967248, %v884_v3 }
  0x86   : > { %v217_v61 = vpop.xlane.xlu2 %216  ;;  %v253_v17 = vmul.f32 0.00390625, %v211_v60 }
  0x87   : > { %v301_v44 = vperm.slane %v251_v8, %v884_v3  ;;  %v255_v53 = vmul.f32 0.00390625, %v217_v61 }
  0x88   : > { %v307_v49 = vperm.slane %v253_v17, %v306_v16  ;;  %v326_v16 = vadd.s32 4294967240, %v884_v3 }
  0x89   : > { %v315_v8 = vperm.slane %v255_v53, %v314_v52 }
  0x8c   : > { %v208_v24 = vpop.xlane.xlu0 %207 }
  0x8d   : > { %v252_v26 = vmul.f32 0.00390625, %v208_v24  ;;  %v214_v34 = vpop.xlane.xlu1 %213 }
  0x8e   : > { %v220_v35 = vpop.xlane.xlu2 %219  ;;  %v254_v42 = vmul.f32 0.00390625, %v214_v34 }
  0x8f   : > { %v303_v47 = vperm.slane %v252_v26, %v302_v15  ;;  %v256_v56 = vmul.f32 0.00390625, %v220_v35  ;;  %v334_v35 = vadd.s32 4294967224, %v884_v3 }
  0x90   : > { %v311_v51 = vperm.slane %v254_v42, %v310_v33 }
  0x91   : > { %v305_v50 = vsel %vm304_vm0, %v303_v47, %v301_v44  ;;  %v319_v15 = vperm.slane %v256_v56, %v318_v55 }
  0x92   : > { %v309_v54 = vsel %vm308_vm1, %v307_v49, %v305_v50  ;;  %v338_v50 = vadd.s32 4294967216, %v884_v3 }
  0x93   : > { %v313_v60 = vsel %vm312_vm2, %v311_v51, %v309_v54  ;;  %v342_v54 = vadd.s32 4294967208, %v884_v3 }
  0x94   : > { %v223_v58 = vpop.xlane.xlu0 %222  ;;  %v317_v61 = vsel %vm316_vm3, %v315_v8, %v313_v60  ;;  %v346_v60 = vadd.s32 4294967200, %v884_v3  ;;  %v350_v8 = vadd.s32 4294967192, %v884_v3 }
  0x95   : > { %v257_v62 = vmul.f32 0.00390625, %v223_v58  ;;  %v226_v63 = vpop.xlane.xlu1 %225  ;;  %v321_v33 = vsel %vm320_vm4, %v319_v15, %v317_v61 }
  0x96   : > { %v229_v7 = vpop.xlane.xlu2 %228  ;;  %v258_v17 = vmul.f32 0.00390625, %v226_v63 }
  0x97   : > { %v323_v24 = vperm.slane %v257_v62, %v322_v57  ;;  %v259_v26 = vmul.f32 0.00390625, %v229_v7 }
  0x98   : > { %v327_v34 = vperm.slane %v258_v17, %v326_v16 }
  0x99   : > { %v325_v42 = vsel %vm324_vm5, %v323_v24, %v321_v33  ;;  %v331_v49 = vperm.slane %v259_v26, %v330_v25  ;;  %v354_v25 = vadd.s32 4294967184, %v884_v3 }
  0x9a   : > { %v329_v52 = vsel %vm328_vm6, %v327_v34, %v325_v42  ;;  %v358_v42 = vadd.s32 4294967176, %v884_v3  ;;  %v416_v3 = vshrl.u32 %v299_v59, 7 }
  0x9b   : > { %v333_v56 = vsel %vm332_vm7, %v331_v49, %v329_v52  ;;  %v384_v52 = vld [vmem:[%s994_s2] sm:$0xff] }
  0x9c   : > { %v232_v43 = vpop.xlane.xlu0 %231  ;;  %404 = vmatpush.msra.mxu1 %v384_v52  ;;  %652 = vset.pattern.permute.xlu1 %v416_v3  ;;  %v441_v59 = vadd.s32 32, %v416_v3 }
  0x9d   : > { %v260_v44 = vmul.f32 0.00390625, %v232_v43  ;;  %v235_v47 = vpop.xlane.xlu1 %234 }
  0x9e   : > { %v238_v48 = vpop.xlane.xlu2 %237  ;;  %v261_v51 = vmul.f32 0.00390625, %v235_v47 }
  0x9f   : > { %v335_v53 = vperm.slane %v260_v44, %v334_v35  ;;  %v262_v55 = vmul.f32 0.00390625, %v238_v48 }
  0xa0   : > { %v339_v57 = vperm.slane %v261_v51, %v338_v50 }
  0xa1   : > { %v337_v58 = vsel %vm336_vm8, %v335_v53, %v333_v56  ;;  %v343_v63 = vperm.slane %v262_v55, %v342_v54  ;;  %v429_v55 = vadd.s32 16, %v416_v3  ;;  %v423_v56 = vadd.s32 8, %v416_v3 }
  0xa2   : > { %v341_v17 = vsel %vm340_vm9, %v339_v57, %v337_v58 }
  0xa3   : > { %v345_v33 = vsel %vm344_vm10, %v343_v63, %v341_v17  ;;  %654 = vset.pattern.permute.xlu0 %v429_v55  ;;  %653 = vset.pattern.permute.xlu2 %v423_v56  ;;  %v501_v17 = vadd.s32 112, %v416_v3 }
  0xa4   : > { %v241_v62 = vpop.xlane.xlu0 %240 }
  0xa5   : > { %v263_v7 = vmul.f32 0.00390625, %v241_v62  ;;  %v244_v15 = vpop.xlane.xlu1 %243 }
  0xa6   : > { %v247_v16 = vpop.xlane.xlu2 %246  ;;  %v264_v61 = vmul.f32 0.00390625, %v244_v15  ;;  %v471_v15 = vadd.s32 72, %v416_v3 }
  0xa7   : > { %v347_v24 = vperm.slane %v263_v7, %v346_v60  ;;  %v265_v26 = vmul.f32 0.00390625, %v247_v16  ;;  %v435_v16 = vadd.s32 24, %v416_v3 }
  0xa8   : > { %v351_v34 = vperm.slane %v264_v61, %v350_v8  ;;  %v447_v61 = vadd.s32 40, %v416_v3 }
  0xa9   : > { %v349_v35 = vsel %vm348_vm11, %v347_v24, %v345_v33  ;;  %v355_v43 = vperm.slane %v265_v26, %v354_v25  ;;  %v453_v24 = vadd.s32 48, %v416_v3  ;;  %v459_v25 = vadd.s32 56, %v416_v3 }
  0xaa   : > { %v353_v48 = vsel %vm352_vm12, %v351_v34, %v349_v35  ;;  %v465_v26 = vadd.s32 64, %v416_v3  ;;  %v507_v33 = vadd.s32 120, %v416_v3  ;;  %v477_v34 = vadd.s32 80, %v416_v3 }
  0xab   : > { %v357_v50 = vsel %vm356_vm13, %v355_v43, %v353_v48  ;;  %v483_v35 = vadd.s32 88, %v416_v3  ;;  %v495_v43 = vadd.s32 104, %v416_v3 }
  0xac   : > { %v250_v44 = vpop.xlane.xlu0 %249 }
  0xad   : > { %v266_v47 = vmul.f32 0.00390625, %v250_v44 }
  0xaf   : > { %v359_v49 = vperm.slane %v266_v47, %v358_v42  ;;  %v489_v42 = vadd.s32 96, %v416_v3 }
  0xb1   : > { %v361_v51 = vsel %vm360_vm14, %v359_v49, %v357_v50 }
  0xb2   : > { %379 = vmatmul.f32.vlgmr.msra.gmra.mxu0 %v361_v51 }
 0x12f   : > { %v380_v53 = vpop.f32.mrf.mxu0 }
 0x130   : > { %v383_v54 = vmax.f32 %v380_v53, 0.0 }
 0x132   : > { %639 = vmatmul.msk.f32.vlgmr.msra.gmra.mxu1 %vm385_vm15, %v383_v54 }
 0x1af   : > { %v406_v57 = vpop.f32.mrf.mxu1 }
 0x1b0   : > { %v409_v58 = vsub.f32 0.0, %v406_v57 }
 0x1b2   : > { %v410_v60 = vmul.f32 1.442695, %v409_v58 }
 0x1b4   : > { %669 = vpow2.f32 %v410_v60 }
 0x1ba   : > { %v670_v62 = vpop.eup %669 }
 0x1bb   : > { %v412_v63 = vadd.f32 1.0, %v670_v62 }
 0x1bd   : > { %671 = vrcp.f32 %v412_v63 }
 0x1c3   : > { %v672_v7 = vpop.eup %671 }
 0x1c4   : > { %v414_v8 = vperm.slane %v672_v7, 0 }
 0x1c6   : > { %431 = vperm.xlu0 %654, %v414_v8   ;;  %425 = vperm.xlu2 %653, %v414_v8  }
 0x1c7   : > { %419 = vperm.xlu1 %652, %v414_v8  }
 0x1ce   : > { %661 = vset.pattern.permute.xlu0 %v471_v15  ;;  %655 = vset.pattern.permute.xlu2 %v435_v16 }
 0x1cf   : > { %656 = vset.pattern.permute.xlu1 %v441_v59 }
 0x1d6   : > { %473 = vperm.xlu0 %661, %v414_v8   ;;  %437 = vperm.xlu2 %655, %v414_v8  }
 0x1d7   : > { %443 = vperm.xlu1 %656, %v414_v8  }
 0x1de   : > { %666 = vset.pattern.permute.xlu0 %v501_v17  ;;  %657 = vset.pattern.permute.xlu2 %v447_v61 }
 0x1df   : > { %658 = vset.pattern.permute.xlu1 %v453_v24 }
 0x1e6   : > { %503 = vperm.xlu0 %666, %v414_v8   ;;  %449 = vperm.xlu2 %657, %v414_v8  }
 0x1e7   : > { %455 = vperm.xlu1 %658, %v414_v8  }
 0x1ee   : > { %659 = vset.pattern.permute.xlu2 %v459_v25  ;;  %668 = vset.pattern.permute.xlu0 %v507_v33 }
 0x1ef   : > { %660 = vset.pattern.permute.xlu1 %v465_v26 }
 0x1f6   : > { %461 = vperm.xlu2 %659, %v414_v8  }
 0x1f7   : > { %467 = vperm.xlu1 %660, %v414_v8  }
 0x1fe   : > { %662 = vset.pattern.permute.xlu2 %v477_v34 }
 0x1ff   : > { %663 = vset.pattern.permute.xlu1 %v483_v35 }
 0x206   : > { %479 = vperm.xlu2 %662, %v414_v8  }
 0x207   : > { %485 = vperm.xlu1 %663, %v414_v8  }
 0x20e   : > { %664 = vset.pattern.permute.xlu2 %v489_v42 }
 0x20f   : > { %665 = vset.pattern.permute.xlu1 %v495_v43 }
 0x216   : > { %491 = vperm.xlu2 %664, %v414_v8  }
 0x217   : > { %497 = vperm.xlu1 %665, %v414_v8  }
 0x21e   : > { %667 = vset.pattern.permute.xlu2 %v507_v33 }
 0x220   : > { %v426_v44 = vpop.permute.xlu2 %425 }
 0x221   : > { %v513_v47 = vmul.f32 %v426_v44, %v744_v9  ;;  %v514_v48 = vmul.f32 %v426_v44, %v747_v10 }
 0x223   : > { %545 = vst [vmem:[%s923_s30 + $0x10] sm:$0xff] %v513_v47 }
 0x224   : > { %546 = vst [vmem:[%s923_s30 + $0x18] sm:$0xff] %v514_v48 }
 0x226   : > { %509 = vperm.xlu2 %667, %v414_v8  }
 0x230   : > { %v438_v49 = vpop.permute.xlu2 %437 }
 0x231   : > { %v517_v50 = vmul.f32 %v438_v49, %v750_v11  ;;  %v518_v51 = vmul.f32 %v438_v49, %v753_v12 }
 0x233   : > { %549 = vst [vmem:[%s923_s30 + $0x30] sm:$0xff] %v517_v50 }
 0x234   : > { %550 = vst [vmem:[%s923_s30 + $0x38] sm:$0xff] %v518_v51 }
 0x238   : > { %v432_v52 = vpop.permute.xlu0 %431 }
 0x239   : > { %v515_v9 = vmul.f32 %v432_v52, %v726_v2  ;;  %v516_v10 = vmul.f32 %v432_v52, %v731_v4  ;;  %v420_v53 = vpop.permute.xlu1 %419 }
 0x23a   : > { %v511_v54 = vmul.f32 %v420_v53, %v720_v0  ;;  %v512_v3 = vmul.f32 %v420_v53, %v723_v1 }
 0x23b   : > { %547 = vst [vmem:[%s923_s30 + $0x20] sm:$0xff] %v515_v9 }
 0x23c   : > { %548 = vst [vmem:[%s923_s30 + $0x28] sm:$0xff] %v516_v10 }
 0x23d   : > { %543 = vst [vmem:[%s923_s30] sm:$0xff] %v511_v54 }
 0x23e   : > { %544 = vst [vmem:[%s923_s30 + $0x8] sm:$0xff] %v512_v3 }
 0x240   : > { %v450_v11 = vpop.permute.xlu2 %449 }
 0x241   : > { %v521_v12 = vmul.f32 %v450_v11, %v756_v13  ;;  %v522_v2 = vmul.f32 %v450_v11, %v759_v14 }
 0x243   : > { %553 = vst [vmem:[%s923_s30 + $0x50] sm:$0xff] %v521_v12 }
 0x244   : > { %554 = vst [vmem:[%s923_s30 + $0x58] sm:$0xff] %v522_v2 }
 0x248   : > { %v474_v0 = vpop.permute.xlu0 %473 }
 0x249   : > { %v529_v1 = vmul.f32 %v474_v0, %v792_v27  ;;  %v530_v4 = vmul.f32 %v474_v0, %v795_v28  ;;  %v444_v55 = vpop.permute.xlu1 %443 }
 0x24a   : > { %v519_v56 = vmul.f32 %v444_v55, %v734_v5  ;;  %v520_v57 = vmul.f32 %v444_v55, %v737_v6 }
 0x24b   : > { %561 = vst [vmem:[%s923_s30 + $0x90] sm:$0xff] %v529_v1 }
 0x24c   : > { %562 = vst [vmem:[%s923_s30 + $0x98] sm:$0xff] %v530_v4 }
 0x24d   : > { %551 = vst [vmem:[%s923_s30 + $0x40] sm:$0xff] %v519_v56 }
 0x24e   : > { %552 = vst [vmem:[%s923_s30 + $0x48] sm:$0xff] %v520_v57 }
 0x250   : > { %v462_v13 = vpop.permute.xlu2 %461 }
 0x251   : > { %v525_v14 = vmul.f32 %v462_v13, %v774_v20  ;;  %v526_v27 = vmul.f32 %v462_v13, %v777_v21 }
 0x253   : > { %557 = vst [vmem:[%s923_s30 + $0x70] sm:$0xff] %v525_v14 }
 0x254   : > { %558 = vst [vmem:[%s923_s30 + $0x78] sm:$0xff] %v526_v27 }
 0x258   : > { %v504_v5 = vpop.permute.xlu0 %503 }
 0x259   : > { %v539_v6 = vmul.f32 %v504_v5, %v828_v40  ;;  %v540_v28 = vmul.f32 %v504_v5, %v831_v41  ;;  %v456_v58 = vpop.permute.xlu1 %455 }
 0x25a   : > { %v523_v60 = vmul.f32 %v456_v58, %v768_v18  ;;  %v524_v62 = vmul.f32 %v456_v58, %v771_v19 }
 0x25b   : > { %571 = vst [vmem:[%s923_s30 + $0xe0] sm:$0xff] %v539_v6 }
 0x25c   : > { %572 = vst [vmem:[%s923_s30 + $0xe8] sm:$0xff] %v540_v28 }
 0x25d   : > { %555 = vst [vmem:[%s923_s30 + $0x60] sm:$0xff] %v523_v60 }
 0x25e   : > { %556 = vst [vmem:[%s923_s30 + $0x68] sm:$0xff] %v524_v62 }
 0x260   : > { %v480_v20 = vpop.permute.xlu2 %479 }
 0x261   : > { %v531_v21 = vmul.f32 %v480_v20, %v798_v29  ;;  %v532_v40 = vmul.f32 %v480_v20, %v801_v30 }
 0x263   : > { %563 = vst [vmem:[%s923_s30 + $0xa0] sm:$0xff] %v531_v21 }
 0x264   : > { %564 = vst [vmem:[%s923_s30 + $0xa8] sm:$0xff] %v532_v40 }
 0x269   : > { %v468_v41 = vpop.permute.xlu1 %467 }
 0x26a   : > { %v527_v18 = vmul.f32 %v468_v41, %v780_v22  ;;  %v528_v19 = vmul.f32 %v468_v41, %v783_v23 }
 0x26c   : > { %559 = vst [vmem:[%s923_s30 + $0x80] sm:$0xff] %v527_v18 }
 0x26d   : > { %560 = vst [vmem:[%s923_s30 + $0x88] sm:$0xff] %v528_v19 }
 0x270   : > { %v492_v63 = vpop.permute.xlu2 %491 }
 0x271   : > { %v535_v7 = vmul.f32 %v492_v63, %v816_v36  ;;  %v536_v29 = vmul.f32 %v492_v63, %v819_v37 }
 0x273   : > { %567 = vst [vmem:[%s923_s30 + $0xc0] sm:$0xff] %v535_v7 }
 0x274   : > { %568 = vst [vmem:[%s923_s30 + $0xc8] sm:$0xff] %v536_v29 }
 0x279   : > { %v486_v30 = vpop.permute.xlu1 %485 }
 0x27a   : > { %v533_v8 = vmul.f32 %v486_v30, %v804_v31  ;;  %v534_v22 = vmul.f32 %v486_v30, %v807_v32 }
 0x27c   : > { %565 = vst [vmem:[%s923_s30 + $0xb0] sm:$0xff] %v533_v8 }
 0x27d   : > { %566 = vst [vmem:[%s923_s30 + $0xb8] sm:$0xff] %v534_v22 }
 0x280   : > { %v510_v23 = vpop.permute.xlu2 %509 }
 0x281   : > { %v541_v15 = vmul.f32 %v510_v23, %v840_v45  ;;  %v542_v16 = vmul.f32 %v510_v23, %v843_v46 }
 0x283   : > { %573 = vst [vmem:[%s923_s30 + $0xf0] sm:$0xff] %v541_v15 }
 0x284   : > { %574 = vst [vmem:[%s923_s30 + $0xf8] sm:$0xff] %v542_v16 }
 0x289   : > { %v498_v36 = vpop.permute.xlu1 %497 }
 0x28a   : > { %v537_v37 = vmul.f32 %v498_v36, %v822_v38  ;;  %v538_v59 = vmul.f32 %v498_v36, %v825_v39 }
 0x28c   : > { %569 = vst [vmem:[%s923_s30 + $0xd0] sm:$0xff] %v537_v37 }
 0x28d   : > { %570 = vst [vmem:[%s923_s30 + $0xd8] sm:$0xff] %v538_v59 }
 0x28e PF: > { %s13_s12 = sadd.s32 1, %s679_s12  }
 0x28f   : > { %p10_p4 = scmp.ge.s32.totalorder %s13_s12, 4  }
 0x291   :  { %12 = sbr.rel (!%p10_p4) target bundleno = 1 (0x1), region = 62 }

</bundles_post_ra>
